<compile_context>
chip_gen: v6e
topology: v6e:2x2x1
jax: 0.10.0
libtpu: 0.0.40
codegen_flags: <defaults>
</compile_context>

<pallas_src>
import functools

import jax
import jax.numpy as jnp
from jax.experimental import pallas as pl
from jax.experimental.pallas import tpu as pltpu


# ---------------------------------------------------------------------------
# helpers
# ---------------------------------------------------------------------------
def _round_up(x, m):
    return ((x + m - 1) // m) * m


def _choose_tile(n):
    # Lane-aligned tiles, cap raised to 1024 (perf review): at tile=1024 the
    # A@A pass uses ~13 MiB VMEM (2 bf16 streams x 2 bufs x 2 MiB + 4 MiB f32
    # acc), which fits every generation including v7x (64 MiB physical), while
    # halving redundant HBM re-reads of A relative to tile=512.
    if n >= 1024:
        return 1024
    return max(128, _round_up(n, 128))


def _choose_row_tile(k):
    # Row tiling for the selected-rows Gram kernel: VMEM use stays independent
    # of graph size / pooling ratio.
    kp8 = _round_up(max(k, 8), 8)
    rt = min(256, kp8)          # either the full (8-padded) extent or 256
    kpad = _round_up(kp8, rt)
    return rt, kpad


_VMEM_LIMIT_ADJ = 48 * 1024 * 1024   # headroom for A@A pass; v7x-safe (<= 64 MiB)
_VMEM_LIMIT = 32 * 1024 * 1024


# ---------------------------------------------------------------------------
# Kernel 1: one tiled pass over A@A -> per-row degree + 2-hop reach counts
# (the full N x N A@A is never written to HBM)
# ---------------------------------------------------------------------------
def _adj_stats_kernel(a_ik_ref, a_kj_ref, deg_ref, cnt_ref, acc_ref):
    j = pl.program_id(1)
    k = pl.program_id(2)

    @pl.when((j == 0) & (k == 0))
    def _():
        deg_ref[...] = jnp.zeros_like(deg_ref)
        cnt_ref[...] = jnp.zeros_like(cnt_ref)

    @pl.when(k == 0)
    def _():
        acc_ref[...] = jnp.zeros_like(acc_ref)

    a_ik = a_ik_ref[...]                                    # (tm, tk) bf16
    acc_ref[...] += jnp.dot(a_ik, a_kj_ref[...],
                            preferred_element_type=jnp.float32)

    @pl.when(j == 0)
    def _():  # degree = row sums of A, accumulated over k tiles once (j == 0)
        deg_ref[...] += a_ik.astype(jnp.float32).sum(axis=-1, keepdims=True)

    @pl.when(k == pl.num_programs(2) - 1)
    def _():  # threshold the finished (i, j) block of A@A and row-reduce
        hop = (acc_ref[...] > 0.0).astype(jnp.float32)
        cnt_ref[...] += hop.sum(axis=-1, keepdims=True)


def _adj_stats(A_bf, tile):
    npad = A_bf.shape[0]
    g = npad // tile
    deg, cnt = pl.pallas_call(
        _adj_stats_kernel,
        out_shape=(jax.ShapeDtypeStruct((npad, 1), jnp.float32),
                   jax.ShapeDtypeStruct((npad, 1), jnp.float32)),
        grid_spec=pltpu.PrefetchScalarGridSpec(
            num_scalar_prefetch=0,
            grid=(g, g, g),
            in_specs=[pl.BlockSpec((tile, tile), lambda i, j, k: (i, k)),
                      pl.BlockSpec((tile, tile), lambda i, j, k: (k, j))],
            out_specs=(pl.BlockSpec((tile, 1), lambda i, j, k: (i, 0)),
                       pl.BlockSpec((tile, 1), lambda i, j, k: (i, 0))),
            scratch_shapes=[pltpu.VMEM((tile, tile), jnp.float32)]),
        compiler_params=pltpu.CompilerParams(
            dimension_semantics=("parallel", "arbitrary", "arbitrary"),
            vmem_limit_bytes=_VMEM_LIMIT_ADJ),
    )(A_bf, A_bf)
    return deg[:, 0], cnt[:, 0]


# ---------------------------------------------------------------------------
# Kernel 2: fused score = sigmoid(Z@wf + C@ws + const), lane-dense (1, Np)
# (width-1 projections kept off the MXU: VPU multiply + sublane reduce;
#  ZT streamed as bf16, weights are resident lane-dense tiles)
# ---------------------------------------------------------------------------
def _score_kernel(zt_ref, ct_ref, wf_ref, ws_ref, out_ref):
    fw = jnp.sum(zt_ref[...].astype(jnp.float32) * wf_ref[...],
                 axis=0, keepdims=True)                              # (1, tn)
    sw = jnp.sum(ct_ref[...] * ws_ref[...], axis=0, keepdims=True)   # (1, tn)
    out_ref[...] = jax.nn.sigmoid(fw + sw)


def _scores(ZT, CT, wf_full, ws_full, tile):
    d, npad = ZT.shape
    c = CT.shape[0]
    g = npad // tile
    out = pl.pallas_call(
        _score_kernel,
        out_shape=jax.ShapeDtypeStruct((1, npad), jnp.float32),
        grid_spec=pltpu.PrefetchScalarGridSpec(
            num_scalar_prefetch=0,
            grid=(g,),
            in_specs=[pl.BlockSpec((d, tile), lambda j: (0, j)),
                      pl.BlockSpec((c, tile), lambda j: (0, j)),
                      pl.BlockSpec((d, tile), lambda j: (0, 0)),
                      pl.BlockSpec((c, tile), lambda j: (0, 0))],
            out_specs=pl.BlockSpec((1, tile), lambda j: (0, j))),
        compiler_params=pltpu.CompilerParams(
            dimension_semantics=("parallel",),
            vmem_limit_bytes=_VMEM_LIMIT),
    )(ZT, CT, wf_full, ws_full)
    return out[0]


# ---------------------------------------------------------------------------
# Kernel 3: selected-rows Gram: (A_sel @ A_sel.T) > 0  -> (k, k)
# A is symmetric, so (A@A)[idx][:, idx] == A[idx] @ A[idx].T; this block is
# produced directly on the MXU from the single gathered (k, Np) matrix, with
# row/column tiling so VMEM use is bounded for any k.
# ---------------------------------------------------------------------------
def _sel_gram_kernel(x_ref, y_ref, out_ref, acc_ref):
    kk = pl.program_id(2)

    @pl.when(kk == 0)
    def _():
        acc_ref[...] = jnp.zeros_like(acc_ref)

    acc_ref[...] += jax.lax.dot_general(
        x_ref[...], y_ref[...],
        dimension_numbers=(((1,), (1,)), ((), ())),     # x @ y.T
        preferred_element_type=jnp.float32)

    @pl.when(kk == pl.num_programs(2) - 1)
    def _():
        out_ref[...] = (acc_ref[...] > 0.0).astype(jnp.float32)


def _sel_gram(A_sel_pad, row_tile, np_tile):
    kpad, npad = A_sel_pad.shape
    gr = kpad // row_tile
    gk = npad // np_tile
    return pl.pallas_call(
        _sel_gram_kernel,
        out_shape=jax.ShapeDtypeStruct((kpad, kpad), jnp.float32),
        grid_spec=pltpu.PrefetchScalarGridSpec(
            num_scalar_prefetch=0,
            grid=(gr, gr, gk),
            in_specs=[pl.BlockSpec((row_tile, np_tile), lambda i, j, kk: (i, kk)),
                      pl.BlockSpec((row_tile, np_tile), lambda i, j, kk: (j, kk))],
            out_specs=pl.BlockSpec((row_tile, row_tile), lambda i, j, kk: (i, j)),
            scratch_shapes=[pltpu.VMEM((row_tile, row_tile), jnp.float32)]),
        compiler_params=pltpu.CompilerParams(
            dimension_semantics=("parallel", "parallel", "arbitrary"),
            vmem_limit_bytes=_VMEM_LIMIT),
    )(A_sel_pad, A_sel_pad)


# ---------------------------------------------------------------------------
# Centrality features (node-minor / lane-dense layout: (8, Np))
# ---------------------------------------------------------------------------
def _centrality_features_t(A_bf, deg, two_hop, n_real):
    """Deterministic structural features (approximation of all_centralities).

    # TODO(synk): `all_centralities` uses networkx graph algorithms (closeness,
    # betweenness, ...) with no clean Pallas/JAX equivalent; approximated with
    # 6 deterministic degree / eigenvector-proxy / 2-hop based features.
    """
    npad = A_bf.shape[0]
    # Eigenvector-centrality proxy.  The first power-iteration matvec is folded
    # away: A @ (mask/sqrt(n)) is proportional to the row sums `deg` that the
    # adj-stats kernel already produced, so we start from deg and do 5 more
    # sweeps instead of 10 (perf review: each sweep is a full HBM pass over A).
    v = deg / jnp.maximum(jnp.linalg.norm(deg), 1e-6)
    # TODO(synk): these matvecs still stream A from HBM each iteration; could be
    # a VMEM-resident Pallas matvec loop, but it is centrality-approximation glue.
    for _ in range(5):
        v = jnp.dot(A_bf, v.astype(jnp.bfloat16),
                    preferred_element_type=jnp.float32)
        v = v / jnp.maximum(jnp.linalg.norm(v), 1e-6)
    n1 = jnp.float32(max(n_real - 1, 1))
    feats = jnp.stack(
        [
            deg / n1,                                      # degree centrality
            deg / jnp.maximum(deg.sum(), 1e-6),            # degree share
            v,                                             # eigenvector proxy
            two_hop / jnp.float32(n_real),                 # 2-hop reach
            1.0 / (1.0 + deg),                             # inverse degree
            (deg * deg) / (n1 * n1),                       # squared deg. cent.
        ],
        axis=0,
    ).astype(jnp.float32)                                  # (6, Np)
    ones = jnp.ones((1, npad), jnp.float32)                # bias row
    zeros = jnp.zeros((1, npad), jnp.float32)              # pad row -> 8 sublanes
    return jnp.concatenate([feats, ones, zeros], axis=0)   # (8, Np)


# ---------------------------------------------------------------------------
# Forward pass
# ---------------------------------------------------------------------------
def cent_pool_forward(edge_index, h, params, ratio):
    """CentPool forward. Returns (g, h_new, idx, edge_index_new)."""
    n, d = h.shape
    tile = _choose_tile(n)
    npad = _round_up(n, tile)

    # Dropout in eval mode / p == 0 -> identity.
    Z = h

    # edge_index -> dense symmetric adjacency, built DIRECTLY in bf16 and
    # zero-padded to (npad, npad).  (0/1 entries + f32 accumulation are exact.)
    one = jnp.bfloat16(1.0)
    A_bf = jnp.zeros((npad, npad), jnp.bfloat16)
    A_bf = A_bf.at[edge_index[0], edge_index[1]].set(one)
    A_bf = A_bf.at[edge_index[1], edge_index[0]].set(one)

    # Single tiled Pallas pass over A@A: degree + 2-hop reach per node.
    deg, two_hop = _adj_stats(A_bf, tile)

    # Centrality features, already lane-dense (8, npad).
    CT = _centrality_features_t(A_bf, deg, two_hop, n)

    # Fold final_proj weights/biases into the projection vectors so the score
    # kernel is pure VPU work:  w = Z@(Wf*w0) + C@(Ws*w1) + (bf*w0+bs*w1+bfin).
    wf = (params["Wf"] * params["Wfin"][0]).astype(jnp.float32)        # (d, 1)
    const = (params["bf"] * params["Wfin"][0]
             + params["bs"] * params["Wfin"][1] + params["bfin"])
    extra = jnp.stack([const, jnp.float32(0.0)]).reshape(2, 1)
    ws = jnp.concatenate(
        [(params["Ws"] * params["Wfin"][1]).astype(jnp.float32), extra],
        axis=0)                                                        # (8, 1)

    # ZT streamed as bf16 (halves the d x Np HBM traffic of the score kernel);
    # weights pre-broadcast once to resident lane-dense tiles.
    ZT = jnp.pad(Z.T, ((0, 0), (0, npad - n))).astype(jnp.bfloat16)    # (d, npad)
    wf_full = jnp.broadcast_to(wf, (d, tile))
    ws_full = jnp.broadcast_to(ws, (8, tile))
    scores = _scores(ZT, CT, wf_full, ws_full, tile)[:n]               # (n,)

    # top_k_pool (Graph-U-Net style top_k_graph):
    # TODO(synk): top_k_pool is defined elsewhere in the repo; implemented as
    # standard top-k gating + 2-hop induced, row-normalized adjacency.
    k = max(2, int(ratio * n))
    vals, idx = jax.lax.top_k(scores, k)                               # (k,), (k,)
    new_h = h[idx] * vals[:, None]          # k x d gather + gate (plain JAX)

    # (A@A)[idx][:, idx] via symmetry: (A[idx] @ A[idx].T) > 0.
    row_tile, kpad = _choose_row_tile(k)
    A_sel = jnp.pad(A_bf[idx], ((0, kpad - k), (0, 0)))                # (kpad, npad)
    sub = _sel_gram(A_sel, row_tile, tile)[:k, :k]                     # (k, k)
    g = sub / jnp.maximum(sub.sum(axis=1, keepdims=True), 1e-6)

    # Mirrors the reference `edge_index = edge_index[:, idx]` (indexes edge
    # columns by the selected node indices, as in the PyTorch module).
    new_edge_index = edge_index[:, idx]
    return g, new_h, idx, new_edge_index


def init_params(key, in_dim, cent_num=6):
    k1, k2, k3 = jax.random.split(key, 3)
    return {
        # stored transposed relative to torch.nn.Linear.weight: (in, out)
        "Wf": 0.1 * jax.random.normal(k1, (in_dim, 1), jnp.float32),
        "bf": jnp.float32(0.01),
        "Ws": 0.1 * jax.random.normal(k2, (cent_num, 1), jnp.float32),
        "bs": jnp.float32(-0.02),
        "Wfin": 0.1 * jax.random.normal(k3, (2,), jnp.float32),
        "bfin": jnp.float32(0.05),
    }


# ---------------------------------------------------------------------------
if __name__ == "__main__":
    N, D = 16, 32          # nodes, feature dim (in_dim)
    ratio = 0.5
    key = jax.random.PRNGKey(0)
    kh, kp = jax.random.split(key)

    h = jax.random.normal(kh, (N, D), jnp.float32)
    # ring graph: N undirected edges
    src = jnp.arange(N, dtype=jnp.int32)
    dst = (src + 1) % N
    edge_index = jnp.stack([src, dst], axis=0)                 # (2, N)

    params = init_params(kp, D)

    fwd = jax.jit(functools.partial(cent_pool_forward, ratio=ratio))
    g, new_h, idx, new_ei = fwd(edge_index, h, params)
    jax.block_until_ready((g, new_h, idx, new_ei))

    k = max(2, int(ratio * N))
    assert g.shape == (k, k)
    assert new_h.shape == (k, D)
    assert idx.shape == (k,)
    assert new_ei.shape == (2, k)
    assert bool(jnp.all(jnp.isfinite(g))) and bool(jnp.all(jnp.isfinite(new_h)))
    print("KERNEL_OK")
</pallas_src>

<mosaic_0001>
module attributes {stable_mosaic.version = 11 : i64} {
  func.func @_adj_stats_kernel(%arg0: i32, %arg1: i32, %arg2: i32, %arg3: memref<128x128xbf16, #tpu.memory_space<vmem>>, %arg4: memref<128x128xbf16, #tpu.memory_space<vmem>>, %arg5: memref<128x1xf32, #tpu.memory_space<vmem>>, %arg6: memref<128x1xf32, #tpu.memory_space<vmem>>, %arg7: memref<128x128xf32, #tpu.memory_space<vmem>>) attributes {dimension_semantics = [#tpu.dimension_semantics<parallel>, #tpu.dimension_semantics<arbitrary>, #tpu.dimension_semantics<arbitrary>], iteration_bounds = array<i64: 1, 1, 1>, scalar_prefetch = 0 : i64, scratch_operands = 1 : i64, tpu.core_type = #tpu.core_type<tc>, window_params = [{transform_indices = @transform_0, window_bounds = array<i64: 128, 128>}, {transform_indices = @transform_1, window_bounds = array<i64: 128, 128>}, {transform_indices = @transform_2, window_bounds = array<i64: 128, 1>}, {transform_indices = @transform_3, window_bounds = array<i64: 128, 1>}]} {
    %c0_i32 = arith.constant 0 : i32
    %0 = arith.cmpi eq, %arg1, %c0_i32 : i32
    %c0_i32_0 = arith.constant 0 : i32
    %1 = arith.cmpi eq, %arg2, %c0_i32_0 : i32
    %2 = arith.andi %0, %1 : i1
    %3 = arith.extui %2 : i1 to i32
    %c0_i32_1 = arith.constant 0 : i32
    %4 = arith.cmpi ne, %3, %c0_i32_1 : i32
    scf.if %4 {
      %cst_15 = arith.constant 0.000000e+00 : f32
      %20 = vector.broadcast %cst_15 : f32 to vector<128x1xf32>
      %c0_16 = arith.constant 0 : index
      %c0_17 = arith.constant 0 : index
      %21 = vector.load %arg5[%c0_16, %c0_17] : memref<128x1xf32, #tpu.memory_space<vmem>>, vector<128x1xf32>
      tpu.vector_store %arg5[%c0_16, %c0_17], %20 {strides = array<i32>} : memref<128x1xf32, #tpu.memory_space<vmem>>, vector<128x1xf32>,
      %cst_18 = arith.constant 0.000000e+00 : f32
      %22 = vector.broadcast %cst_18 : f32 to vector<128x1xf32>
      %c0_19 = arith.constant 0 : index
      %c0_20 = arith.constant 0 : index
      %23 = vector.load %arg6[%c0_19, %c0_20] : memref<128x1xf32, #tpu.memory_space<vmem>>, vector<128x1xf32>
      tpu.vector_store %arg6[%c0_19, %c0_20], %22 {strides = array<i32>} : memref<128x1xf32, #tpu.memory_space<vmem>>, vector<128x1xf32>,
    } else {
    }
    %c0_i32_2 = arith.constant 0 : i32
    %5 = arith.cmpi eq, %arg2, %c0_i32_2 : i32
    %6 = arith.extui %5 : i1 to i32
    %c0_i32_3 = arith.constant 0 : i32
    %7 = arith.cmpi ne, %6, %c0_i32_3 : i32
    scf.if %7 {
      %cst_15 = arith.constant 0.000000e+00 : f32
      %20 = vector.broadcast %cst_15 : f32 to vector<128x128xf32>
      %c0_16 = arith.constant 0 : index
      %c0_17 = arith.constant 0 : index
      %21 = vector.load %arg7[%c0_16, %c0_17] : memref<128x128xf32, #tpu.memory_space<vmem>>, vector<128x128xf32>
      tpu.vector_store %arg7[%c0_16, %c0_17], %20 {strides = array<i32>} : memref<128x128xf32, #tpu.memory_space<vmem>>, vector<128x128xf32>,
    } else {
    }
    %c0 = arith.constant 0 : index
    %c0_4 = arith.constant 0 : index
    %8 = vector.load %arg3[%c0, %c0_4] : memref<128x128xbf16, #tpu.memory_space<vmem>>, vector<128x128xbf16>
    %c0_5 = arith.constant 0 : index
    %c0_6 = arith.constant 0 : index
    %9 = vector.load %arg7[%c0_5, %c0_6] : memref<128x128xf32, #tpu.memory_space<vmem>>, vector<128x128xf32>
    %c0_7 = arith.constant 0 : index
    %c0_8 = arith.constant 0 : index
    %10 = vector.load %arg4[%c0_7, %c0_8] : memref<128x128xbf16, #tpu.memory_space<vmem>>, vector<128x128xbf16>
    %cst = arith.constant dense<0.000000e+00> : vector<128x128xf32>
    %11 = tpu.matmul %8, %10, %cst {dimension_numbers = #tpu.dot_dimension_numbers<[1], [0], [0], [1], [0, 0, 1, 1], [], []>} : vector<128x128xbf16>, vector<128x128xbf16>, vector<128x128xf32> -> vector<128x128xf32>
    %12 = arith.addf %9, %11 : vector<128x128xf32>
    %c0_9 = arith.constant 0 : index
    %c0_10 = arith.constant 0 : index
    %13 = vector.load %arg7[%c0_9, %c0_10] : memref<128x128xf32, #tpu.memory_space<vmem>>, vector<128x128xf32>
    tpu.vector_store %arg7[%c0_9, %c0_10], %12 {strides = array<i32>} : memref<128x128xf32, #tpu.memory_space<vmem>>, vector<128x128xf32>,
    %c0_i32_11 = arith.constant 0 : i32
    %14 = arith.cmpi eq, %arg1, %c0_i32_11 : i32
    %15 = arith.extui %14 : i1 to i32
    %c0_i32_12 = arith.constant 0 : i32
    %16 = arith.cmpi ne, %15, %c0_i32_12 : i32
    scf.if %16 {
      %c0_15 = arith.constant 0 : index
      %c0_16 = arith.constant 0 : index
      %20 = vector.load %arg5[%c0_15, %c0_16] : memref<128x1xf32, #tpu.memory_space<vmem>>, vector<128x1xf32>
      %21 = arith.extf %8 : vector<128x128xbf16> to vector<128x128xf32>
      %cst_17 = arith.constant dense<0.000000e+00> : vector<128xf32>
      %22 = vector.multi_reduction <add>, %21, %cst_17 [1] : vector<128x128xf32> to vector<128xf32>
      %23 = vector.shape_cast %22 : vector<128xf32> to vector<128x1xf32>
      %24 = arith.addf %20, %23 : vector<128x1xf32>
      %c0_18 = arith.constant 0 : index
      %c0_19 = arith.constant 0 : index
      %25 = vector.load %arg5[%c0_18, %c0_19] : memref<128x1xf32, #tpu.memory_space<vmem>>, vector<128x1xf32>
      tpu.vector_store %arg5[%c0_18, %c0_19], %24 {strides = array<i32>} : memref<128x1xf32, #tpu.memory_space<vmem>>, vector<128x1xf32>,
    } else {
    }
    %c0_i32_13 = arith.constant 0 : i32
    %17 = arith.cmpi eq, %arg2, %c0_i32_13 : i32
    %18 = arith.extui %17 : i1 to i32
    %c0_i32_14 = arith.constant 0 : i32
    %19 = arith.cmpi ne, %18, %c0_i32_14 : i32
    scf.if %19 {
      %c0_15 = arith.constant 0 : index
      %c0_16 = arith.constant 0 : index
      %20 = vector.load %arg7[%c0_15, %c0_16] : memref<128x128xf32, #tpu.memory_space<vmem>>, vector<128x128xf32>
      %cst_17 = arith.constant 0.000000e+00 : f32
      %21 = vector.broadcast %cst_17 : f32 to vector<128x128xf32>
      %22 = arith.cmpf ogt, %20, %21 : vector<128x128xf32>
      %23 = arith.extui %22 : vector<128x128xi1> to vector<128x128xi32>
      %24 = arith.sitofp %23 : vector<128x128xi32> to vector<128x128xf32>
      %c0_18 = arith.constant 0 : index
      %c0_19 = arith.constant 0 : index
      %25 = vector.load %arg6[%c0_18, %c0_19] : memref<128x1xf32, #tpu.memory_space<vmem>>, vector<128x1xf32>
      %cst_20 = arith.constant dense<0.000000e+00> : vector<128xf32>
      %26 = vector.multi_reduction <add>, %24, %cst_20 [1] : vector<128x128xf32> to vector<128xf32>
      %27 = vector.shape_cast %26 : vector<128xf32> to vector<128x1xf32>
      %28 = arith.addf %25, %27 : vector<128x1xf32>
      %c0_21 = arith.constant 0 : index
      %c0_22 = arith.constant 0 : index
      %29 = vector.load %arg6[%c0_21, %c0_22] : memref<128x1xf32, #tpu.memory_space<vmem>>, vector<128x1xf32>
      tpu.vector_store %arg6[%c0_21, %c0_22], %28 {strides = array<i32>} : memref<128x1xf32, #tpu.memory_space<vmem>>, vector<128x1xf32>,
    } else {
    }
    return
  }
  func.func @transform_0(%arg0: i32, %arg1: i32, %arg2: i32) -> (i32, i32) {
    %c0_i32 = arith.constant 0 : i32
    return %arg0, %arg2 : i32, i32
  }
  func.func @transform_1(%arg0: i32, %arg1: i32, %arg2: i32) -> (i32, i32) {
    %c0_i32 = arith.constant 0 : i32
    return %arg2, %arg1 : i32, i32
  }
  func.func @transform_2(%arg0: i32, %arg1: i32, %arg2: i32) -> (i32, i32) {
    %c0_i32 = arith.constant 0 : i32
    %c0_i32_0 = arith.constant 0 : i32
    return %arg0, %c0_i32 : i32, i32
  }
  func.func @transform_3(%arg0: i32, %arg1: i32, %arg2: i32) -> (i32, i32) {
    %c0_i32 = arith.constant 0 : i32
    %c0_i32_0 = arith.constant 0 : i32
    return %arg0, %c0_i32 : i32, i32
  }
}

module attributes {stable_mosaic.version = 11 : i64} {
  func.func @_score_kernel(%arg0: i32, %arg1: memref<32x128xbf16, #tpu.memory_space<vmem>>, %arg2: memref<8x128xf32, #tpu.memory_space<vmem>>, %arg3: memref<32x128xf32, #tpu.memory_space<vmem>>, %arg4: memref<8x128xf32, #tpu.memory_space<vmem>>, %arg5: memref<1x128xf32, #tpu.memory_space<vmem>>) attributes {dimension_semantics = [#tpu.dimension_semantics<parallel>], iteration_bounds = array<i64: 1>, scalar_prefetch = 0 : i64, scratch_operands = 0 : i64, tpu.core_type = #tpu.core_type<tc>, window_params = [{transform_indices = @transform_0, window_bounds = array<i64: 32, 128>}, {transform_indices = @transform_1, window_bounds = array<i64: 8, 128>}, {pipeline_mode = #tpu.pipeline_mode<synchronous>, transform_indices = @transform_2, window_bounds = array<i64: 32, 128>}, {pipeline_mode = #tpu.pipeline_mode<synchronous>, transform_indices = @transform_3, window_bounds = array<i64: 8, 128>}, {transform_indices = @transform_4, window_bounds = array<i64: 1, 128>}]} {
    %c0 = arith.constant 0 : index
    %c0_0 = arith.constant 0 : index
    %0 = vector.load %arg1[%c0, %c0_0] : memref<32x128xbf16, #tpu.memory_space<vmem>>, vector<32x128xbf16>
    %1 = arith.extf %0 : vector<32x128xbf16> to vector<32x128xf32>
    %c0_1 = arith.constant 0 : index
    %c0_2 = arith.constant 0 : index
    %2 = vector.load %arg3[%c0_1, %c0_2] : memref<32x128xf32, #tpu.memory_space<vmem>>, vector<32x128xf32>
    %3 = arith.mulf %1, %2 : vector<32x128xf32>
    %cst = arith.constant dense<0.000000e+00> : vector<128xf32>
    %4 = vector.multi_reduction <add>, %3, %cst [0] : vector<32x128xf32> to vector<128xf32>
    %5 = vector.shape_cast %4 : vector<128xf32> to vector<1x128xf32>
    %c0_3 = arith.constant 0 : index
    %c0_4 = arith.constant 0 : index
    %6 = vector.load %arg2[%c0_3, %c0_4] : memref<8x128xf32, #tpu.memory_space<vmem>>, vector<8x128xf32>
    %c0_5 = arith.constant 0 : index
    %c0_6 = arith.constant 0 : index
    %7 = vector.load %arg4[%c0_5, %c0_6] : memref<8x128xf32, #tpu.memory_space<vmem>>, vector<8x128xf32>
    %8 = arith.mulf %6, %7 : vector<8x128xf32>
    %cst_7 = arith.constant dense<0.000000e+00> : vector<128xf32>
    %9 = vector.multi_reduction <add>, %8, %cst_7 [0] : vector<8x128xf32> to vector<128xf32>
    %10 = vector.shape_cast %9 : vector<128xf32> to vector<1x128xf32>
    %11 = arith.addf %5, %10 : vector<1x128xf32>
    %12 = arith.negf %11 : vector<1x128xf32>
    %13 = math.exp %12 : vector<1x128xf32>
    %cst_8 = arith.constant 1.000000e+00 : f32
    %14 = vector.broadcast %cst_8 : f32 to vector<1x128xf32>
    %15 = arith.addf %14, %13 : vector<1x128xf32>
    %16 = arith.divf %14, %15 : vector<1x128xf32>
    %c0_9 = arith.constant 0 : index
    %c0_10 = arith.constant 0 : index
    %17 = vector.load %arg5[%c0_9, %c0_10] : memref<1x128xf32, #tpu.memory_space<vmem>>, vector<1x128xf32>
    tpu.vector_store %arg5[%c0_9, %c0_10], %16 {strides = array<i32>} : memref<1x128xf32, #tpu.memory_space<vmem>>, vector<1x128xf32>,
    return
  }
  func.func @transform_0(%arg0: i32) -> (i32, i32) {
    %c0_i32 = arith.constant 0 : i32
    %c0_i32_0 = arith.constant 0 : i32
    return %c0_i32, %arg0 : i32, i32
  }
  func.func @transform_1(%arg0: i32) -> (i32, i32) {
    %c0_i32 = arith.constant 0 : i32
    %c0_i32_0 = arith.constant 0 : i32
    return %c0_i32, %arg0 : i32, i32
  }
  func.func @transform_2(%arg0: i32) -> (i32, i32) {
    %c0_i32 = arith.constant 0 : i32
    %c0_i32_0 = arith.constant 0 : i32
    %c0_i32_1 = arith.constant 0 : i32
    return %c0_i32, %c0_i32_0 : i32, i32
  }
  func.func @transform_3(%arg0: i32) -> (i32, i32) {
    %c0_i32 = arith.constant 0 : i32
    %c0_i32_0 = arith.constant 0 : i32
    %c0_i32_1 = arith.constant 0 : i32
    return %c0_i32, %c0_i32_0 : i32, i32
  }
  func.func @transform_4(%arg0: i32) -> (i32, i32) {
    %c0_i32 = arith.constant 0 : i32
    %c0_i32_0 = arith.constant 0 : i32
    return %c0_i32, %arg0 : i32, i32
  }
}

module attributes {stable_mosaic.version = 11 : i64} {
  func.func @_sel_gram_kernel(%arg0: i32, %arg1: i32, %arg2: i32, %arg3: memref<8x128xbf16, #tpu.memory_space<vmem>>, %arg4: memref<8x128xbf16, #tpu.memory_space<vmem>>, %arg5: memref<8x8xf32, #tpu.memory_space<vmem>>, %arg6: memref<8x8xf32, #tpu.memory_space<vmem>>) attributes {dimension_semantics = [#tpu.dimension_semantics<parallel>, #tpu.dimension_semantics<parallel>, #tpu.dimension_semantics<arbitrary>], iteration_bounds = array<i64: 1, 1, 1>, scalar_prefetch = 0 : i64, scratch_operands = 1 : i64, tpu.core_type = #tpu.core_type<tc>, window_params = [{transform_indices = @transform_0, window_bounds = array<i64: 8, 128>}, {transform_indices = @transform_1, window_bounds = array<i64: 8, 128>}, {transform_indices = @transform_2, window_bounds = array<i64: 8, 8>}]} {
    %c0_i32 = arith.constant 0 : i32
    %0 = arith.cmpi eq, %arg2, %c0_i32 : i32
    %1 = arith.extui %0 : i1 to i32
    %c0_i32_0 = arith.constant 0 : i32
    %2 = arith.cmpi ne, %1, %c0_i32_0 : i32
    scf.if %2 {
      %cst_10 = arith.constant 0.000000e+00 : f32
      %12 = vector.broadcast %cst_10 : f32 to vector<8x8xf32>
      %c0_11 = arith.constant 0 : index
      %c0_12 = arith.constant 0 : index
      %13 = vector.load %arg6[%c0_11, %c0_12] : memref<8x8xf32, #tpu.memory_space<vmem>>, vector<8x8xf32>
      tpu.vector_store %arg6[%c0_11, %c0_12], %12 {strides = array<i32>} : memref<8x8xf32, #tpu.memory_space<vmem>>, vector<8x8xf32>,
    } else {
    }
    %c0 = arith.constant 0 : index
    %c0_1 = arith.constant 0 : index
    %3 = vector.load %arg6[%c0, %c0_1] : memref<8x8xf32, #tpu.memory_space<vmem>>, vector<8x8xf32>
    %c0_2 = arith.constant 0 : index
    %c0_3 = arith.constant 0 : index
    %4 = vector.load %arg3[%c0_2, %c0_3] : memref<8x128xbf16, #tpu.memory_space<vmem>>, vector<8x128xbf16>
    %c0_4 = arith.constant 0 : index
    %c0_5 = arith.constant 0 : index
    %5 = vector.load %arg4[%c0_4, %c0_5] : memref<8x128xbf16, #tpu.memory_space<vmem>>, vector<8x128xbf16>
    %cst = arith.constant dense<0.000000e+00> : vector<8x8xf32>
    %6 = tpu.matmul %4, %5, %cst {dimension_numbers = #tpu.dot_dimension_numbers<[1], [1], [0], [0], [0, 0, 1, 0], [], []>} : vector<8x128xbf16>, vector<8x128xbf16>, vector<8x8xf32> -> vector<8x8xf32>
    %7 = arith.addf %3, %6 : vector<8x8xf32>
    %c0_6 = arith.constant 0 : index
    %c0_7 = arith.constant 0 : index
    %8 = vector.load %arg6[%c0_6, %c0_7] : memref<8x8xf32, #tpu.memory_space<vmem>>, vector<8x8xf32>
    tpu.vector_store %arg6[%c0_6, %c0_7], %7 {strides = array<i32>} : memref<8x8xf32, #tpu.memory_space<vmem>>, vector<8x8xf32>,
    %c0_i32_8 = arith.constant 0 : i32
    %9 = arith.cmpi eq, %arg2, %c0_i32_8 : i32
    %10 = arith.extui %9 : i1 to i32
    %c0_i32_9 = arith.constant 0 : i32
    %11 = arith.cmpi ne, %10, %c0_i32_9 : i32
    scf.if %11 {
      %c0_10 = arith.constant 0 : index
      %c0_11 = arith.constant 0 : index
      %12 = vector.load %arg6[%c0_10, %c0_11] : memref<8x8xf32, #tpu.memory_space<vmem>>, vector<8x8xf32>
      %cst_12 = arith.constant 0.000000e+00 : f32
      %13 = vector.broadcast %cst_12 : f32 to vector<8x8xf32>
      %14 = arith.cmpf ogt, %12, %13 : vector<8x8xf32>
      %15 = arith.extui %14 : vector<8x8xi1> to vector<8x8xi32>
      %16 = arith.sitofp %15 : vector<8x8xi32> to vector<8x8xf32>
      %c0_13 = arith.constant 0 : index
      %c0_14 = arith.constant 0 : index
      %17 = vector.load %arg5[%c0_13, %c0_14] : memref<8x8xf32, #tpu.memory_space<vmem>>, vector<8x8xf32>
      tpu.vector_store %arg5[%c0_13, %c0_14], %16 {strides = array<i32>} : memref<8x8xf32, #tpu.memory_space<vmem>>, vector<8x8xf32>,
    } else {
    }
    return
  }
  func.func @transform_0(%arg0: i32, %arg1: i32, %arg2: i32) -> (i32, i32) {
    %c0_i32 = arith.constant 0 : i32
    return %arg0, %arg2 : i32, i32
  }
  func.func @transform_1(%arg0: i32, %arg1: i32, %arg2: i32) -> (i32, i32) {
    %c0_i32 = arith.constant 0 : i32
    return %arg1, %arg2 : i32, i32
  }
  func.func @transform_2(%arg0: i32, %arg1: i32, %arg2: i32) -> (i32, i32) {
    %c0_i32 = arith.constant 0 : i32
    return %arg0, %arg1 : i32, i32
  }
}

</mosaic_0001>

<bundles_post_ra>
// kernel: cent_pool_forward.3
= control target key start
LH: loop header
LB: loop body
LE: loop exit
PB: predicated region body
PF: predicated region fallthrough
CT: control target
= control target key end

     0   :  { %vm20_vm0 = vcmask 7168   ;;  %v722_v32 = vmov 0.0   ;;  %s1191_s1 = inlined_call_operand.vmem [shape: bf16[128,128], index: 1, kind: input, shape index: {}, may-alias: {0,1}]   ;;  %s1192_s0 = inlined_call_operand.vmem [shape: bf16[128,128], index: 0, kind: input, shape index: {}, may-alias: {0,1}]   ;;  %s1193_s2 = inlined_call_operand.vmem [shape: f32[128,1], index: 2, kind: output, shape index: {0}]   ;;  %s1194_s3 = inlined_call_operand.vmem [shape: f32[128,1], index: 3, kind: output, shape index: {1}]  }
   0x1   :  { %v698_v0 = vld [vmem:[%s1191_s1 + $0x38] sm:$0xff]   ;;  %v699_v1 = vld [vmem:[%s1191_s1 + $0x30] sm:$0xff]   ;;  %v700_v2 = vld [vmem:[%s1191_s1 + $0x28] sm:$0xff]   ;;  %21 = vst.msk [vmem:[%s1193_s2] sm:$0xff] %vm20_vm0, %v722_v32 }
   0x2   :  { %649 = vmatprep.subr.bf16.mxu0 %v698_v0  ;;  %681 = vmatprep.subr.bf16.mxu1 %v698_v0  ;;  %v701_v3 = vld [vmem:[%s1191_s1 + $0x20] sm:$0xff]   ;;  %v74_v6 = vld [vmem:[%s1192_s0 + $0x8] sm:$0xff]   ;;  %v702_v9 = vld [vmem:[%s1191_s1 + $0x18] sm:$0xff]   ;;  %22 = vst.msk [vmem:[%s1193_s2 + $0x8] sm:$0xff] %vm20_vm0, %v722_v32 }
   0x3   :  { %650 = vmatpush3.bf16.msra.mxu0 %v698_v0  ;;  %689 = vmatpush3.bf16.msra.mxu1 %v698_v0  ;;  %v72_v4 = vld [vmem:[%s1192_s0] sm:$0xff]   ;;  %v366_v8 = vunpack.c.l.bf16 %v74_v6  ;;  %v367_v11 = vunpack.c.h.bf16 %v74_v6  ;;  %v703_v12 = vld [vmem:[%s1191_s1 + $0x10] sm:$0xff]   ;;  %v704_v16 = vld [vmem:[%s1191_s1 + $0x8] sm:$0xff]   ;;  %23 = vst.msk [vmem:[%s1193_s2 + $0x10] sm:$0xff] %vm20_vm0, %v722_v32 }
   0x4   :  { %651 = vmatprep.subr.bf16.mxu0 %v699_v1  ;;  %682 = vmatprep.subr.bf16.mxu1 %v699_v1  ;;  %v80_v5 = vld [vmem:[%s1192_s0 + $0x20] sm:$0xff]   ;;  %v364_v7 = vunpack.c.l.bf16 %v72_v4  ;;  %v365_v10 = vunpack.c.h.bf16 %v72_v4  ;;  %v76_v13 = vld [vmem:[%s1192_s0 + $0x10] sm:$0xff]   ;;  %v78_v17 = vld [vmem:[%s1192_s0 + $0x18] sm:$0xff]   ;;  %24 = vst.msk [vmem:[%s1193_s2 + $0x18] sm:$0xff] %vm20_vm0, %v722_v32 }
   0x5   :  { %665 = vmatprep.mubr.bf16.mxu0 %v72_v4  ;;  %673 = vmatprep.mubr.bf16.mxu1 %v80_v5  ;;  %v368_v14 = vunpack.c.l.bf16 %v76_v13  ;;  %v369_v15 = vunpack.c.h.bf16 %v76_v13  ;;  %v370_v18 = vunpack.c.l.bf16 %v78_v17  ;;  %v371_v19 = vunpack.c.h.bf16 %v78_v17  ;;  %v705_v20 = vld [vmem:[%s1191_s1] sm:$0xff]   ;;  %v82_v23 = vld [vmem:[%s1192_s0 + $0x28] sm:$0xff]   ;;  %v84_v24 = vld [vmem:[%s1192_s0 + $0x30] sm:$0xff]   ;;  %25 = vst.msk [vmem:[%s1193_s2 + $0x20] sm:$0xff] %vm20_vm0, %v722_v32 }
   0x6   :  { %380 = vadd.xlane.f32.xlu0 %v364_v7  ;;  %384 = vadd.xlane.f32.xlu1 %v366_v8  ;;  %v372_v21 = vunpack.c.l.bf16 %v80_v5  ;;  %v373_v22 = vunpack.c.h.bf16 %v80_v5  ;;  %v374_v25 = vunpack.c.l.bf16 %v82_v23  ;;  %v375_v26 = vunpack.c.h.bf16 %v82_v23  ;;  %v86_v27 = vld [vmem:[%s1192_s0 + $0x38] sm:$0xff]   ;;  %26 = vst.msk [vmem:[%s1193_s2 + $0x28] sm:$0xff] %vm20_vm0, %v722_v32  ;;  %27 = vst.msk [vmem:[%s1193_s2 + $0x30] sm:$0xff] %vm20_vm0, %v722_v32 }
   0x7   :  { %652 = vmatpush3.bf16.msra.mxu0 %v699_v1  ;;  %690 = vmatpush3.bf16.msra.mxu1 %v699_v1  ;;  %v376_v28 = vunpack.c.l.bf16 %v84_v24  ;;  %v377_v29 = vunpack.c.h.bf16 %v84_v24  ;;  %v378_v30 = vunpack.c.l.bf16 %v86_v27  ;;  %v379_v31 = vunpack.c.h.bf16 %v86_v27  ;;  %28 = vst.msk [vmem:[%s1193_s2 + $0x38] sm:$0xff] %vm20_vm0, %v722_v32  ;;  %29 = vst.msk [vmem:[%s1193_s2 + $0x40] sm:$0xff] %vm20_vm0, %v722_v32 }
   0x8   :  { %653 = vmatprep.subr.bf16.mxu0 %v700_v2  ;;  %683 = vmatprep.subr.bf16.mxu1 %v700_v2  ;;  %30 = vst.msk [vmem:[%s1193_s2 + $0x48] sm:$0xff] %vm20_vm0, %v722_v32  ;;  %31 = vst.msk [vmem:[%s1193_s2 + $0x50] sm:$0xff] %vm20_vm0, %v722_v32  ;;  %v348_v33 = vld [vmem:[%s1193_s2] sm:$0xff] }
   0x9   :  { %32 = vst.msk [vmem:[%s1193_s2 + $0x58] sm:$0xff] %vm20_vm0, %v722_v32  ;;  %33 = vst.msk [vmem:[%s1193_s2 + $0x60] sm:$0xff] %vm20_vm0, %v722_v32  ;;  %v349_v39 = vld [vmem:[%s1193_s2 + $0x8] sm:$0xff] }
   0xa   :  { %382 = vadd.xlane.f32.xlu0 %v365_v10  ;;  %386 = vadd.xlane.f32.xlu1 %v367_v11  ;;  %34 = vst.msk [vmem:[%s1193_s2 + $0x68] sm:$0xff] %vm20_vm0, %v722_v32  ;;  %35 = vst.msk [vmem:[%s1193_s2 + $0x70] sm:$0xff] %vm20_vm0, %v722_v32  ;;  %v350_v34 = vld [vmem:[%s1193_s2 + $0x10] sm:$0xff] }
   0xb   :  { %654 = vmatpush3.bf16.msra.mxu0 %v700_v2  ;;  %691 = vmatpush3.bf16.msra.mxu1 %v700_v2  ;;  %36 = vst.msk [vmem:[%s1193_s2 + $0x78] sm:$0xff] %vm20_vm0, %v722_v32  ;;  %39 = vst.msk [vmem:[%s1194_s3 + $0x10] sm:$0xff] %vm20_vm0, %v722_v32  ;;  %v351_v40 = vld [vmem:[%s1193_s2 + $0x18] sm:$0xff] }
   0xc   :  { %655 = vmatprep.subr.bf16.mxu0 %v701_v3  ;;  %684 = vmatprep.subr.bf16.mxu1 %v701_v3  ;;  %37 = vst.msk [vmem:[%s1194_s3] sm:$0xff] %vm20_vm0, %v722_v32  ;;  %38 = vst.msk [vmem:[%s1194_s3 + $0x8] sm:$0xff] %vm20_vm0, %v722_v32  ;;  %v352_v45 = vld [vmem:[%s1193_s2 + $0x20] sm:$0xff] }
   0xd   :  { %40 = vst.msk [vmem:[%s1194_s3 + $0x18] sm:$0xff] %vm20_vm0, %v722_v32  ;;  %41 = vst.msk [vmem:[%s1194_s3 + $0x20] sm:$0xff] %vm20_vm0, %v722_v32  ;;  %v353_v46 = vld [vmem:[%s1193_s2 + $0x28] sm:$0xff]  ;;  %v354_v51 = vld [vmem:[%s1193_s2 + $0x30] sm:$0xff] }
   0xe   :  { %388 = vadd.xlane.f32.xlu0 %v368_v14  ;;  %390 = vadd.xlane.f32.xlu1 %v369_v15  ;;  %42 = vst.msk [vmem:[%s1194_s3 + $0x28] sm:$0xff] %vm20_vm0, %v722_v32  ;;  %43 = vst.msk [vmem:[%s1194_s3 + $0x30] sm:$0xff] %vm20_vm0, %v722_v32  ;;  %v355_v52 = vld [vmem:[%s1193_s2 + $0x38] sm:$0xff]  ;;  %v356_v57 = vld [vmem:[%s1193_s2 + $0x40] sm:$0xff] }
   0xf   :  { %656 = vmatpush3.bf16.msra.mxu0 %v701_v3  ;;  %692 = vmatpush3.bf16.msra.mxu1 %v701_v3  ;;  %44 = vst.msk [vmem:[%s1194_s3 + $0x38] sm:$0xff] %vm20_vm0, %v722_v32  ;;  %45 = vst.msk [vmem:[%s1194_s3 + $0x40] sm:$0xff] %vm20_vm0, %v722_v32  ;;  %v357_v58 = vld [vmem:[%s1193_s2 + $0x48] sm:$0xff]  ;;  %v358_v63 = vld [vmem:[%s1193_s2 + $0x50] sm:$0xff] }
  0x10   :  { %657 = vmatprep.subr.bf16.mxu0 %v702_v9  ;;  %685 = vmatprep.subr.bf16.mxu1 %v702_v9  ;;  %46 = vst.msk [vmem:[%s1194_s3 + $0x48] sm:$0xff] %vm20_vm0, %v722_v32  ;;  %47 = vst.msk [vmem:[%s1194_s3 + $0x50] sm:$0xff] %vm20_vm0, %v722_v32  ;;  %v359_v0 = vld [vmem:[%s1193_s2 + $0x58] sm:$0xff]  ;;  %v360_v5 = vld [vmem:[%s1193_s2 + $0x60] sm:$0xff] }
  0x11   :  { %48 = vst.msk [vmem:[%s1194_s3 + $0x58] sm:$0xff] %vm20_vm0, %v722_v32  ;;  %49 = vst.msk [vmem:[%s1194_s3 + $0x60] sm:$0xff] %vm20_vm0, %v722_v32  ;;  %v362_v11 = vld [vmem:[%s1193_s2 + $0x70] sm:$0xff] }
  0x12   :  { %392 = vadd.xlane.f32.xlu0 %v370_v18  ;;  %394 = vadd.xlane.f32.xlu1 %v371_v19  ;;  %50 = vst.msk [vmem:[%s1194_s3 + $0x68] sm:$0xff] %vm20_vm0, %v722_v32  ;;  %51 = vst.msk [vmem:[%s1194_s3 + $0x70] sm:$0xff] %vm20_vm0, %v722_v32 }
  0x13   :  { %658 = vmatpush3.bf16.msra.mxu0 %v702_v9  ;;  %693 = vmatpush3.bf16.msra.mxu1 %v702_v9  ;;  %52 = vst.msk [vmem:[%s1194_s3 + $0x78] sm:$0xff] %vm20_vm0, %v722_v32 }
  0x14   :  { %659 = vmatprep.subr.bf16.mxu0 %v703_v12  ;;  %686 = vmatprep.subr.bf16.mxu1 %v703_v12 }
  0x16   :  { %396 = vadd.xlane.f32.xlu0 %v372_v21  ;;  %398 = vadd.xlane.f32.xlu1 %v373_v22 }
  0x17   :  { %660 = vmatpush3.bf16.msra.mxu0 %v703_v12  ;;  %694 = vmatpush3.bf16.msra.mxu1 %v703_v12 }
  0x18   :  { %661 = vmatprep.subr.bf16.mxu0 %v704_v16  ;;  %687 = vmatprep.subr.bf16.mxu1 %v704_v16 }
  0x1a   :  { %400 = vadd.xlane.f32.xlu0 %v374_v25  ;;  %402 = vadd.xlane.f32.xlu1 %v375_v26 }
  0x1b   :  { %662 = vmatpush3.bf16.msra.mxu0 %v704_v16  ;;  %695 = vmatpush3.bf16.msra.mxu1 %v704_v16 }
  0x1c   :  { %663 = vmatprep.subr.bf16.mxu0 %v705_v20  ;;  %688 = vmatprep.subr.bf16.mxu1 %v705_v20 }
  0x1e   :  { %404 = vadd.xlane.f32.xlu0 %v376_v28  ;;  %406 = vadd.xlane.f32.xlu1 %v377_v29  ;;  %v363_v28 = vld [vmem:[%s1193_s2 + $0x78] sm:$0xff] }
  0x1f   :  { %664 = vmatpush3.bf16.msra.mxu0 %v705_v20  ;;  %696 = vmatpush3.bf16.msra.mxu1 %v705_v20 }
  0x22   :  { %666 = vmatmul.mubr.bf16.vlgmr.msra.gmra.mxu0 %v74_v6  ;;  %674 = vmatmul.mubr.bf16.vlgmr.msra.gmra.mxu1 %v82_v23  ;;  %v361_v6 = vld [vmem:[%s1193_s2 + $0x68] sm:$0xff] }
  0x23   :  { %669 = vmatprep.mubr.bf16.mxu0 %v76_v13  ;;  %677 = vmatprep.mubr.bf16.mxu1 %v84_v24 }
  0x24   :  { %408 = vadd.xlane.f32.xlu0 %v378_v30  ;;  %410 = vadd.xlane.f32.xlu1 %v379_v31 }
  0x2a   :  { %670 = vmatmul.mubr.bf16.gmra.mxu0 %v78_v17  ;;  %678 = vmatmul.mubr.bf16.gmra.mxu1 %v86_v27 }
  0x8f   :  { %v381_v35 = vpop.xlane.xlu0 %380  ;;  %v385_v36 = vpop.xlane.xlu1 %384 }
  0x90   :  { %v412_v37 = vadd.f32 %v381_v35, %v348_v33  ;;  %v414_v38 = vadd.f32 %v385_v36, %v350_v34 }
  0x92   :  { %429 = vst.msk [vmem:[%s1193_s2] sm:$0xff] %vm20_vm0, %v412_v37  ;;  %431 = vst.msk [vmem:[%s1193_s2 + $0x10] sm:$0xff] %vm20_vm0, %v414_v38 }
  0x93   :  { %v383_v41 = vpop.xlane.xlu0 %382  ;;  %v387_v42 = vpop.xlane.xlu1 %386 }
  0x94   :  { %v413_v43 = vadd.f32 %v383_v41, %v349_v39  ;;  %v415_v44 = vadd.f32 %v387_v42, %v351_v40 }
  0x96   :  { %430 = vst.msk [vmem:[%s1193_s2 + $0x8] sm:$0xff] %vm20_vm0, %v413_v43  ;;  %432 = vst.msk [vmem:[%s1193_s2 + $0x18] sm:$0xff] %vm20_vm0, %v415_v44 }
  0x97   :  { %v389_v47 = vpop.xlane.xlu0 %388  ;;  %v391_v48 = vpop.xlane.xlu1 %390 }
  0x98   :  { %v416_v49 = vadd.f32 %v389_v47, %v352_v45  ;;  %v417_v50 = vadd.f32 %v391_v48, %v353_v46 }
  0x9a   :  { %433 = vst.msk [vmem:[%s1193_s2 + $0x20] sm:$0xff] %vm20_vm0, %v416_v49  ;;  %434 = vst.msk [vmem:[%s1193_s2 + $0x28] sm:$0xff] %vm20_vm0, %v417_v50  ;;  %v514_v50 = vld [vmem:[%s1194_s3 + $0x10] sm:$0xff] }
  0x9b   :  { %v393_v53 = vpop.xlane.xlu0 %392  ;;  %v395_v54 = vpop.xlane.xlu1 %394 }
  0x9c   :  { %v418_v55 = vadd.f32 %v393_v53, %v354_v51  ;;  %v419_v56 = vadd.f32 %v395_v54, %v355_v52  ;;  %v522_v53 = vld [vmem:[%s1194_s3 + $0x50] sm:$0xff]  ;;  %v515_v54 = vld [vmem:[%s1194_s3 + $0x18] sm:$0xff] }
  0x9e   :  { %435 = vst.msk [vmem:[%s1193_s2 + $0x30] sm:$0xff] %vm20_vm0, %v418_v55  ;;  %436 = vst.msk [vmem:[%s1193_s2 + $0x38] sm:$0xff] %vm20_vm0, %v419_v56 }
  0x9f   :  { %v397_v59 = vpop.xlane.xlu0 %396  ;;  %v399_v60 = vpop.xlane.xlu1 %398 }
  0xa0   :  { %v420_v61 = vadd.f32 %v397_v59, %v356_v57  ;;  %v421_v62 = vadd.f32 %v399_v60, %v357_v58  ;;  %v512_v58 = vld [vmem:[%s1194_s3] sm:$0xff]  ;;  %v523_v59 = vld [vmem:[%s1194_s3 + $0x58] sm:$0xff] }
  0xa2   :  { %437 = vst.msk [vmem:[%s1193_s2 + $0x40] sm:$0xff] %vm20_vm0, %v420_v61  ;;  %438 = vst.msk [vmem:[%s1193_s2 + $0x48] sm:$0xff] %vm20_vm0, %v421_v62 }
  0xa3   :  { %v401_v1 = vpop.xlane.xlu0 %400  ;;  %v403_v2 = vpop.xlane.xlu1 %402 }
  0xa4   :  { %v422_v3 = vadd.f32 %v401_v1, %v358_v63  ;;  %v423_v4 = vadd.f32 %v403_v2, %v359_v0  ;;  %v520_v0 = vld [vmem:[%s1194_s3 + $0x40] sm:$0xff]  ;;  %v513_v1 = vld [vmem:[%s1194_s3 + $0x8] sm:$0xff] }
  0xa6   :  { %439 = vst.msk [vmem:[%s1193_s2 + $0x50] sm:$0xff] %vm20_vm0, %v422_v3  ;;  %440 = vst.msk [vmem:[%s1193_s2 + $0x58] sm:$0xff] %vm20_vm0, %v423_v4 }
  0xa7   :  { %v405_v7 = vpop.xlane.xlu0 %404  ;;  %v407_v8 = vpop.xlane.xlu1 %406 }
  0xa8   :  { %v424_v9 = vadd.f32 %v405_v7, %v360_v5  ;;  %v425_v10 = vadd.f32 %v407_v8, %v361_v6  ;;  %v521_v6 = vld [vmem:[%s1194_s3 + $0x48] sm:$0xff]  ;;  %v518_v7 = vld [vmem:[%s1194_s3 + $0x30] sm:$0xff] }
  0xaa   :  { %441 = vst.msk [vmem:[%s1193_s2 + $0x60] sm:$0xff] %vm20_vm0, %v424_v9  ;;  %442 = vst.msk [vmem:[%s1193_s2 + $0x68] sm:$0xff] %vm20_vm0, %v425_v10 }
  0xad   :  { %v409_v12 = vpop.xlane.xlu0 %408  ;;  %v411_v31 = vpop.xlane.xlu1 %410 }
  0xae   :  { %v426_v13 = vadd.f32 %v409_v12, %v362_v11  ;;  %v427_v35 = vadd.f32 %v411_v31, %v363_v28  ;;  %v516_v12 = vld [vmem:[%s1194_s3 + $0x20] sm:$0xff] }
  0xb0   :  { %443 = vst.msk [vmem:[%s1193_s2 + $0x70] sm:$0xff] %vm20_vm0, %v426_v13  ;;  %444 = vst.msk [vmem:[%s1193_s2 + $0x78] sm:$0xff] %vm20_vm0, %v427_v35  ;;  %v519_v13 = vld [vmem:[%s1194_s3 + $0x38] sm:$0xff] }
  0xe2   :  { %v667_v14 = vpop.f32.mrf.mxu0  ;;  %v675_v15 = vpop.f32.mrf.mxu1 }
  0xe3   :  { %vm466_vm1 = vcmp.gt.f32.partialorder %v667_v14, 0.0  ;;  %vm474_vm2 = vcmp.gt.f32.partialorder %v675_v15, 0.0 }
  0xe4   :  { %v250_v16 = vpop.f32.mrf.mxu0  ;;  %v282_v17 = vpop.f32.mrf.mxu1  ;;  %v619_v18 = vsel %vm466_vm1, 1.0, %v722_v32  ;;  %v627_v21 = vsel %vm474_vm2, 1.0, %v722_v32 }
  0xe5   :  { %532 = vadd.xlane.f32.xlu0 %v619_v18  ;;  %vm464_vm4 = vcmp.gt.f32.partialorder %v250_v16, 0.0  ;;  %vm472_vm6 = vcmp.gt.f32.partialorder %v282_v17, 0.0  ;;  %v524_v18 = vld [vmem:[%s1194_s3 + $0x60] sm:$0xff] }
  0xe6   :  { %v668_v19 = vpop.f32.mrf.mxu0  ;;  %v676_v20 = vpop.f32.mrf.mxu1  ;;  %v617_v26 = vsel %vm464_vm4, 1.0, %v722_v32  ;;  %v625_v33 = vsel %vm472_vm6, 1.0, %v722_v32 }
  0xe7   :  { %vm467_vm3 = vcmp.gt.f32.partialorder %v668_v19, 0.0  ;;  %vm475_vm5 = vcmp.gt.f32.partialorder %v676_v20, 0.0  ;;  %v517_v19 = vld [vmem:[%s1194_s3 + $0x28] sm:$0xff] }
  0xe8   :  { %v253_v22 = vpop.f32.mrf.mxu0  ;;  %v620_v23 = vsel %vm467_vm3, 1.0, %v722_v32  ;;  %v285_v25 = vpop.f32.mrf.mxu1  ;;  %v628_v27 = vsel %vm475_vm5, 1.0, %v722_v32 }
  0xe9   :  { %548 = vadd.xlane.f32.xlu0 %v627_v21  ;;  %534 = vadd.xlane.f32.xlu1 %v620_v23  ;;  %vm465_vm7 = vcmp.gt.f32.partialorder %v253_v22, 0.0  ;;  %vm473_vm9 = vcmp.gt.f32.partialorder %v285_v25, 0.0  ;;  %v525_v25 = vld [vmem:[%s1194_s3 + $0x68] sm:$0xff] }
  0xea   :  { %v671_v24 = vpop.f32.mrf.mxu0  ;;  %v679_v30 = vpop.f32.mrf.mxu1  ;;  %v618_v34 = vsel %vm465_vm7, 1.0, %v722_v32  ;;  %v626_v39 = vsel %vm473_vm9, 1.0, %v722_v32 }
  0xeb   :  { %vm470_vm8 = vcmp.gt.f32.partialorder %v671_v24, 0.0  ;;  %vm478_vm14 = vcmp.gt.f32.partialorder %v679_v30, 0.0  ;;  %v526_v24 = vld [vmem:[%s1194_s3 + $0x70] sm:$0xff]  ;;  %v527_v30 = vld [vmem:[%s1194_s3 + $0x78] sm:$0xff] }
  0xec   :  { %v266_v29 = vpop.f32.mrf.mxu0  ;;  %v298_v37 = vpop.f32.mrf.mxu1  ;;  %v623_v38 = vsel %vm470_vm8, 1.0, %v722_v32  ;;  %v631_v47 = vsel %vm478_vm14, 1.0, %v722_v32 }
  0xed   :  { %528 = vadd.xlane.f32.xlu0 %v617_v26  ;;  %550 = vadd.xlane.f32.xlu1 %v628_v27  ;;  %vm468_vm10 = vcmp.gt.f32.partialorder %v266_v29, 0.0  ;;  %vm476_vm13 = vcmp.gt.f32.partialorder %v298_v37, 0.0 }
  0xee   :  { %v672_v36 = vpop.f32.mrf.mxu0  ;;  %v680_v41 = vpop.f32.mrf.mxu1  ;;  %v621_v42 = vsel %vm468_vm10, 1.0, %v722_v32  ;;  %v629_v45 = vsel %vm476_vm13, 1.0, %v722_v32 }
  0xef   :  { %vm471_vm11 = vcmp.gt.f32.partialorder %v672_v36, 0.0  ;;  %vm479_vm1 = vcmp.gt.f32.partialorder %v680_v41, 0.0 }
  0xf0   :  { %v269_v40 = vpop.f32.mrf.mxu0  ;;  %v624_v43 = vsel %vm471_vm11, 1.0, %v722_v32  ;;  %v301_v44 = vpop.f32.mrf.mxu1  ;;  %v632_v49 = vsel %vm479_vm1, 1.0, %v722_v32 }
  0xf1   :  { %544 = vadd.xlane.f32.xlu0 %v625_v33  ;;  %530 = vadd.xlane.f32.xlu1 %v618_v34  ;;  %vm469_vm12 = vcmp.gt.f32.partialorder %v269_v40, 0.0  ;;  %vm477_vm15 = vcmp.gt.f32.partialorder %v301_v44, 0.0 }
  0xf2   :  { %v622_v46 = vsel %vm469_vm12, 1.0, %v722_v32  ;;  %v630_v48 = vsel %vm477_vm15, 1.0, %v722_v32 }
  0xf5   :  { %546 = vadd.xlane.f32.xlu1 %v626_v39  ;;  %540 = vadd.xlane.f32.xlu0 %v623_v38 }
  0xf9   :  { %536 = vadd.xlane.f32.xlu0 %v621_v42  ;;  %542 = vadd.xlane.f32.xlu1 %v624_v43 }
  0xfd   :  { %552 = vadd.xlane.f32.xlu0 %v629_v45  ;;  %538 = vadd.xlane.f32.xlu1 %v622_v46 }
 0x101   :  { %556 = vadd.xlane.f32.xlu0 %v631_v47  ;;  %554 = vadd.xlane.f32.xlu1 %v630_v48 }
 0x105   :  { %558 = vadd.xlane.f32.xlu1 %v632_v49 }
 0x16e   :  { %v533_v51 = vpop.xlane.xlu0 %532 }
 0x16f   :  { %v562_v52 = vadd.f32 %v533_v51, %v514_v50 }
 0x171   :  { %579 = vst.msk [vmem:[%s1194_s3 + $0x10] sm:$0xff] %vm20_vm0, %v562_v52 }
 0x172   :  { %v549_v32 = vpop.xlane.xlu0 %548  ;;  %v535_v55 = vpop.xlane.xlu1 %534 }
 0x173   :  { %v570_v56 = vadd.f32 %v549_v32, %v522_v53  ;;  %v563_v57 = vadd.f32 %v535_v55, %v515_v54 }
 0x175   :  { %587 = vst.msk [vmem:[%s1194_s3 + $0x50] sm:$0xff] %vm20_vm0, %v570_v56  ;;  %580 = vst.msk [vmem:[%s1194_s3 + $0x18] sm:$0xff] %vm20_vm0, %v563_v57 }
 0x176   :  { %v529_v60 = vpop.xlane.xlu0 %528  ;;  %v551_v61 = vpop.xlane.xlu1 %550 }
 0x177   :  { %v560_v62 = vadd.f32 %v529_v60, %v512_v58  ;;  %v571_v63 = vadd.f32 %v551_v61, %v523_v59 }
 0x179   :  { %577 = vst.msk [vmem:[%s1194_s3] sm:$0xff] %vm20_vm0, %v560_v62  ;;  %588 = vst.msk [vmem:[%s1194_s3 + $0x58] sm:$0xff] %vm20_vm0, %v571_v63 }
 0x17a   :  { %v545_v2 = vpop.xlane.xlu0 %544  ;;  %v531_v3 = vpop.xlane.xlu1 %530 }
 0x17b   :  { %v568_v4 = vadd.f32 %v545_v2, %v520_v0  ;;  %v561_v5 = vadd.f32 %v531_v3, %v513_v1 }
 0x17d   :  { %585 = vst.msk [vmem:[%s1194_s3 + $0x40] sm:$0xff] %vm20_vm0, %v568_v4  ;;  %578 = vst.msk [vmem:[%s1194_s3 + $0x8] sm:$0xff] %vm20_vm0, %v561_v5 }
 0x17e   :  { %v547_v8 = vpop.xlane.xlu1 %546  ;;  %v541_v9 = vpop.xlane.xlu0 %540 }
 0x17f   :  { %v569_v10 = vadd.f32 %v547_v8, %v521_v6  ;;  %v566_v11 = vadd.f32 %v541_v9, %v518_v7 }
 0x181   :  { %586 = vst.msk [vmem:[%s1194_s3 + $0x48] sm:$0xff] %vm20_vm0, %v569_v10  ;;  %583 = vst.msk [vmem:[%s1194_s3 + $0x30] sm:$0xff] %vm20_vm0, %v566_v11 }
 0x182   :  { %v537_v14 = vpop.xlane.xlu0 %536  ;;  %v543_v15 = vpop.xlane.xlu1 %542 }
 0x183   :  { %v564_v16 = vadd.f32 %v537_v14, %v516_v12  ;;  %v567_v17 = vadd.f32 %v543_v15, %v519_v13 }
 0x185   :  { %581 = vst.msk [vmem:[%s1194_s3 + $0x20] sm:$0xff] %vm20_vm0, %v564_v16  ;;  %584 = vst.msk [vmem:[%s1194_s3 + $0x38] sm:$0xff] %vm20_vm0, %v567_v17 }
 0x186   :  { %v553_v20 = vpop.xlane.xlu0 %552  ;;  %v539_v21 = vpop.xlane.xlu1 %538 }
 0x187   :  { %v572_v22 = vadd.f32 %v553_v20, %v524_v18  ;;  %v565_v23 = vadd.f32 %v539_v21, %v517_v19 }
 0x189   :  { %589 = vst.msk [vmem:[%s1194_s3 + $0x60] sm:$0xff] %vm20_vm0, %v572_v22  ;;  %582 = vst.msk [vmem:[%s1194_s3 + $0x28] sm:$0xff] %vm20_vm0, %v565_v23 }
 0x18a   :  { %v557_v26 = vpop.xlane.xlu0 %556  ;;  %v555_v27 = vpop.xlane.xlu1 %554 }
 0x18b   :  { %v574_v28 = vadd.f32 %v557_v26, %v526_v24  ;;  %v573_v29 = vadd.f32 %v555_v27, %v525_v25 }
 0x18d   :  { %591 = vst.msk [vmem:[%s1194_s3 + $0x70] sm:$0xff] %vm20_vm0, %v574_v28  ;;  %590 = vst.msk [vmem:[%s1194_s3 + $0x68] sm:$0xff] %vm20_vm0, %v573_v29 }
 0x18e   :  { %v559_v31 = vpop.xlane.xlu1 %558 }
 0x18f   :  { %v575_v33 = vadd.f32 %v559_v31, %v527_v30 }
 0x191   :  { %592 = vst.msk [vmem:[%s1194_s3 + $0x78] sm:$0xff] %vm20_vm0, %v575_v33 }

// kernel: cent_pool_forward.4
= control target key start
LH: loop header
LB: loop body
LE: loop exit
PB: predicated region body
PF: predicated region fallthrough
CT: control target
= control target key end

     0   :  { %s129_s0 = inlined_call_operand.vmem [shape: bf16[32,128], index: 0, kind: input, shape index: {}]   ;;  %s130_s1 = inlined_call_operand.vmem [shape: f32[8,128], index: 1, kind: input, shape index: {}]   ;;  %s131_s2 = inlined_call_operand.vmem [shape: f32[32,128], index: 2, kind: input, shape index: {}]   ;;  %s132_s3 = inlined_call_operand.vmem [shape: f32[8,128], index: 3, kind: input, shape index: {}]   ;;  %s133_s4 = inlined_call_operand.vmem [shape: f32[1,128], index: 4, kind: output, shape index: {}]  }
   0x1   :  { %v65_v0 = vld [vmem:[%s129_s0] sm:$0xff]   ;;  %v72_v1 = vld [vmem:[%s129_s0 + $0x8] sm:$0xff]   ;;  %v27_v8 = vld [vmem:[%s131_s2 + $0x10] sm:$0xff] }
   0x2   :  { %v25_v2 = vld [vmem:[%s131_s2] sm:$0xff]  ;;  %v66_v3 = vunpack.c.l.bf16 %v65_v0  ;;  %v67_v4 = vunpack.c.h.bf16 %v65_v0  ;;  %v70_v5 = vunpack.c.l.bf16 %v72_v1  ;;  %v71_v6 = vunpack.c.h.bf16 %v72_v1  ;;  %v26_v7 = vld [vmem:[%s131_s2 + $0x8] sm:$0xff]  ;;  %v28_v9 = vld [vmem:[%s131_s2 + $0x18] sm:$0xff] }
   0x3   :  { %v42_v10 = vld [vmem:[%s130_s1] sm:$0xff] }
   0x4   :  { %v43_v11 = vld [vmem:[%s132_s3] sm:$0xff]  ;;  %v29_v12 = vmul.f32 %v66_v3, %v25_v2  ;;  %v30_v13 = vmul.f32 %v67_v4, %v26_v7  ;;  %v31_v14 = vmul.f32 %v70_v5, %v27_v8  ;;  %v32_v16 = vmul.f32 %v71_v6, %v28_v9 }
   0x5   :  { %v44_v15 = vmul.f32 %v43_v11, %v42_v10 }
   0x6   :  { %v33_v17 = vadd.f32 %v30_v13, %v29_v12 }
   0x7   :  { %v45_v18 = vrot.slane %v44_v15, 4 }
   0x8   :  { %v34_v19 = vadd.f32 %v33_v17, %v31_v14 }
   0x9   :  { %v46_v20 = vadd.f32 %v45_v18, %v44_v15 }
   0xa   :  { %v35_v21 = vadd.f32 %v34_v19, %v32_v16 }
   0xb   :  { %v47_v22 = vrot.slane %v46_v20, 2 }
   0xc   :  { %v36_v23 = vrot.slane %v35_v21, 4 }
   0xd   :  { %v48_v24 = vadd.f32 %v47_v22, %v46_v20 }
   0xe   :  { %v37_v25 = vadd.f32 %v36_v23, %v35_v21 }
   0xf   :  { %v49_v27 = vrot.slane %v48_v24, 1 }
  0x10   :  { %v38_v26 = vrot.slane %v37_v25, 2 }
  0x11   :  { %v50_v30 = vadd.f32 %v49_v27, %v48_v24 }
  0x12   :  { %v39_v28 = vadd.f32 %v38_v26, %v37_v25 }
  0x14   :  { %v40_v29 = vrot.slane %v39_v28, 1 }
  0x16   :  { %v41_v31 = vadd.f32 %v40_v29, %v39_v28 }
  0x18   :  { %v51_v32 = vadd.f32 %v50_v30, %v41_v31 }
  0x1a   :  { %v63_v33 = vmul.f32 -1.442695, %v51_v32 }
  0x1c   :  { %73 = vpow2.f32 %v63_v33 }
  0x29   :  { %v74_v34 = vpop.eup %73 }
  0x2a   :  { %v55_v35 = vadd.f32 1.0, %v74_v34 }
  0x2c   :  { %75 = vrcp.f32 %v55_v35 }
  0x39   :  { %v76_v36 = vpop.eup %75 }
  0x3a   :  { %58 = vst [vmem:[%s133_s4] sm:$0x1] %v76_v36 }

// kernel: cent_pool_forward.5
= control target key start
LH: loop header
LB: loop body
LE: loop exit
PB: predicated region body
PF: predicated region fallthrough
CT: control target
= control target key end

     0   :  { %vm16_vm0 = vcmask 64512   ;;  %v87_v0 = vmov 0.0   ;;  %vm88_vm1 = vmmov 0   ;;  %s116_s1 = inlined_call_operand.vmem [shape: bf16[8,128], index: 1, kind: input, shape index: {}, may-alias: {0,1}]   ;;  %s117_s0 = inlined_call_operand.vmem [shape: bf16[8,128], index: 0, kind: input, shape index: {}, may-alias: {0,1}]   ;;  %s118_s2 = inlined_call_operand.vmem [shape: f32[8,8], index: 2, kind: output, shape index: {}]  }
   0x1   :  { %17 = vst.msk [vmem:[#allocation2] sm:$0xff] %vm16_vm0, %v87_v0  ;;  %79 = vmatprep.subr.bf16.mxu0 %v87_v0  ;;  %v20_v1 = vld [vmem:[%s116_s1] sm:$0xf]  ;;  %81 = vmatprep.mubr.msk.bf16.mxu0 %vm88_vm1, %v87_v0 }
   0x2   :  { %80 = vmatpush3.bf16.xpose.msra.mxu0 %v20_v1  ;;  %v19_v2 = vld [vmem:[%s117_s0] sm:$0xf] }
   0x8   :  { %v18_v3 = vld [vmem:[#allocation2] sm:$0xff] }
   0x9   :  { %82 = vmatmul.mubr.bf16.vlgmr.msra.gmra.mxu0 %v19_v2 }
  0xc9   :  { %v55_v4 = vpop.f32.mrf.mxu0 }
  0xca   :  { %v61_v5 = vadd.f32 %v55_v4, %v18_v3 }
  0xcb   :  { %v83_v6 = vpop.f32.mrf.mxu0 }
  0xcc   :  { %63 = vst.msk [vmem:[#allocation2] sm:$0xff] %vm16_vm0, %v61_v5 }
  0xcd   :  { %v58_v7 = vpop.f32.mrf.mxu0 }
  0xcf   :  { %v84_v8 = vpop.f32.mrf.mxu0 }
  0xd3   :  { %v67_v9 = vld [vmem:[#allocation2] sm:$0xff] }
  0xd4   :  { %vm68_vm2 = vcmp.gt.f32.partialorder %v67_v9, 0.0 }
  0xd5   :  { %v76_v10 = vsel %vm68_vm2, 1.0, %v87_v0 }
  0xd6   :  { %71 = vst.msk [vmem:[%s118_s2] sm:$0xff] %vm16_vm0, %v76_v10 }

</bundles_post_ra>
